<compile_context>
chip_gen: v7x
topology: tpu7x:2x2x1
jax: 0.10.0
libtpu: 0.0.40
codegen_flags: <defaults>
</compile_context>

<pallas_src>
import functools

import jax
import jax.numpy as jnp
from jax.experimental import pallas as pl
from jax.experimental.pallas import tpu as pltpu

_NEG = -1e30  # bias for padded class columns -> exp() underflows to exactly 0


def _round_up(v, m):
    return ((v + m - 1) // m) * m


def _pad2(a, shape):
    return jnp.pad(a, [(0, t - s) for s, t in zip(a.shape, shape)])


def _gcn_conv_kernel(adj_ref, x_ref, w_ref, o_ref):
    """One GCN conv layer for a row-tile of nodes: relu((A_tile @ X) @ W_t)."""
    agg = jnp.dot(adj_ref[...], x_ref[...], preferred_element_type=jnp.float32)
    h = jnp.dot(agg.astype(w_ref.dtype), w_ref[...],
                preferred_element_type=jnp.float32)
    o_ref[...] = jnp.maximum(h, 0.0).astype(o_ref.dtype)


def _gcn_head_kernel(adj_ref, h_ref, w2_ref, w3_ref, b_ref, o_ref):
    """Fused conv2 + classifier + log_softmax for a row-tile of nodes."""
    agg = jnp.dot(adj_ref[...], h_ref[...], preferred_element_type=jnp.float32)
    h2 = jnp.maximum(
        jnp.dot(agg.astype(w2_ref.dtype), w2_ref[...],
                preferred_element_type=jnp.float32), 0.0)
    logits = jnp.dot(h2.astype(w3_ref.dtype), w3_ref[...],
                     preferred_element_type=jnp.float32) + b_ref[...]
    # numerically stable log_softmax across the (lane) class dimension
    m = jnp.max(logits, axis=-1, keepdims=True)
    shifted = logits - m
    lse = jnp.log(jnp.sum(jnp.exp(shifted), axis=-1, keepdims=True))
    o_ref[...] = (shifted - lse).astype(o_ref.dtype)


def gcn_forward(x, adj, w1, w2, w3, b3, *, tile_m=None,
                compute_dtype=jnp.bfloat16):
    """Pallas GCN forward: log_softmax(lin(conv2(conv1(x, adj), adj)))."""
    n, c_in = x.shape
    h_dim = w1.shape[0]
    c_out = w3.shape[0]

    if tile_m is None:
        tile_m = 256 if n >= 256 else 128
    n_pad = _round_up(n, tile_m)
    c_in_p = _round_up(c_in, 128)
    h_p = _round_up(h_dim, 128)
    c_out_p = _round_up(c_out, 128)

    # pad + cast operands (bf16 operands, f32 MXU accumulation)
    xp = _pad2(x, (n_pad, c_in_p)).astype(compute_dtype)
    adjp = _pad2(adj, (n_pad, n_pad)).astype(compute_dtype)
    w1t = _pad2(w1.T, (c_in_p, h_p)).astype(compute_dtype)
    w2t = _pad2(w2.T, (h_p, h_p)).astype(compute_dtype)
    w3t = _pad2(w3.T, (h_p, c_out_p)).astype(compute_dtype)
    b3p = jnp.full((1, c_out_p), _NEG, dtype=jnp.float32)
    b3p = b3p.at[0, :c_out].set(b3.astype(jnp.float32))

    grid = (n_pad // tile_m,)
    par = pltpu.CompilerParams(dimension_semantics=("parallel",))
    full = lambda arr: pl.BlockSpec(arr.shape, lambda i: (0, 0))
    itemsize = jnp.dtype(compute_dtype).itemsize

    # ----- layer 1: h1 = relu(adj @ x @ W1^T), row-tiled over nodes -----
    conv1_cost = pl.CostEstimate(
        flops=2 * n_pad * n_pad * c_in_p + 2 * n_pad * c_in_p * h_p,
        transcendentals=0,
        bytes_accessed=(adjp.size + xp.size + w1t.size) * itemsize
        + n_pad * h_p * itemsize,
    )
    h1 = pl.pallas_call(
        _gcn_conv_kernel,
        out_shape=jax.ShapeDtypeStruct((n_pad, h_p), compute_dtype),
        grid=grid,
        in_specs=[
            pl.BlockSpec((tile_m, n_pad), lambda i: (i, 0)),  # adj row tile
            full(xp),                                         # resident X
            full(w1t),                                        # resident W1_t
        ],
        out_specs=pl.BlockSpec((tile_m, h_p), lambda i: (i, 0)),
        compiler_params=par,
        cost_estimate=conv1_cost,
    )(adjp, xp, w1t)

    # TODO(synk): F.dropout(p=0.5) between conv1 and conv2 is identity in eval
    # mode; training-mode dropout (pltpu.prng_*) is not implemented here.

    # ----- layer 2 + classifier + log_softmax (fused) -----
    head_cost = pl.CostEstimate(
        flops=2 * n_pad * n_pad * h_p + 2 * n_pad * h_p * h_p
        + 2 * n_pad * h_p * c_out_p,
        transcendentals=n_pad * c_out_p,
        bytes_accessed=(adjp.size + h1.size + w2t.size + w3t.size) * itemsize
        + b3p.size * 4 + n_pad * c_out_p * 4,
    )
    out = pl.pallas_call(
        _gcn_head_kernel,
        out_shape=jax.ShapeDtypeStruct((n_pad, c_out_p), jnp.float32),
        grid=grid,
        in_specs=[
            pl.BlockSpec((tile_m, n_pad), lambda i: (i, 0)),  # adj row tile
            full(h1),                                         # resident h1
            full(w2t),
            full(w3t),
            full(b3p),
        ],
        out_specs=pl.BlockSpec((tile_m, c_out_p), lambda i: (i, 0)),
        compiler_params=par,
        cost_estimate=head_cost,
    )(adjp, h1, w2t, w3t, b3p)

    return out[:n, :c_out]


def gcn_reference(x, adj, w1, w2, w3, b3, compute_dtype=jnp.bfloat16):
    """Pure-JAX reference mirroring the kernel's bf16/f32 precision handling."""
    f32 = jnp.float32
    cast = lambda a: a.astype(compute_dtype).astype(f32)
    dot = functools.partial(jnp.dot, precision=jax.lax.Precision.HIGHEST)

    agg1 = dot(cast(adj), cast(x))
    h1 = jnp.maximum(dot(cast(agg1), cast(w1.T)), 0.0)
    h1 = cast(h1)                           # h1 is stored as bf16 between kernels
    agg2 = dot(cast(adj), h1)
    h2 = jnp.maximum(dot(cast(agg2), cast(w2.T)), 0.0)
    logits = dot(cast(h2), cast(w3.T)) + b3.astype(f32)
    return jax.nn.log_softmax(logits, axis=1)


if __name__ == "__main__":
    # Small GCN: 256 nodes, 16 -> 32 -> 32 -> 8 classes, tile_m=128 => grid=(2,)
    n_nodes = 256
    in_channels = 16
    hidden_channels = 32
    out_channels = 8

    key = jax.random.PRNGKey(0)
    kx, ka, k1, k2, k3, kb = jax.random.split(key, 6)

    x = jax.random.normal(kx, (n_nodes, in_channels), dtype=jnp.float32)

    # random sparse-ish symmetric adjacency with self loops, row-normalized
    a = (jax.random.uniform(ka, (n_nodes, n_nodes)) < 0.05).astype(jnp.float32)
    a = jnp.maximum(a, a.T) + jnp.eye(n_nodes, dtype=jnp.float32)
    adj = a / jnp.sum(a, axis=1, keepdims=True)

    # Deterministic parameter init.  ConvClass uses F.linear without bias;
    # MLPClassifier (nn.Linear) has a bias.  (Exact orthogonal init is a
    # host-side detail and does not affect the kernel's forward semantics.)
    s1 = 1.0 / jnp.sqrt(jnp.float32(in_channels))
    s2 = 1.0 / jnp.sqrt(jnp.float32(hidden_channels))
    w1 = jax.random.uniform(k1, (hidden_channels, in_channels), jnp.float32, -s1, s1)
    w2 = jax.random.uniform(k2, (hidden_channels, hidden_channels), jnp.float32, -s2, s2)
    w3 = jax.random.uniform(k3, (out_channels, hidden_channels), jnp.float32, -s2, s2)
    b3 = jax.random.uniform(kb, (out_channels,), jnp.float32, -s2, s2)

    y = gcn_forward(x, adj, w1, w2, w3, b3, tile_m=128)
    jax.block_until_ready(y)

    y_ref = gcn_reference(x, adj, w1, w2, w3, b3)

    assert y.shape == (n_nodes, out_channels)
    assert y.dtype == jnp.float32
    assert bool(jnp.all(jnp.isfinite(y)))
    assert jnp.allclose(y, y_ref, atol=2e-2, rtol=2e-2), float(
        jnp.max(jnp.abs(y - y_ref)))

    print("KERNEL_OK")
</pallas_src>

<mosaic_0001>
module attributes {stable_mosaic.version = 11 : i64} {
  func.func @_gcn_conv_kernel(%arg0: i32, %arg1: memref<128x256xbf16, #tpu.memory_space<vmem>>, %arg2: memref<256x128xbf16, #tpu.memory_space<vmem>>, %arg3: memref<128x128xbf16, #tpu.memory_space<vmem>>, %arg4: memref<128x128xbf16, #tpu.memory_space<vmem>>) attributes {dimension_semantics = [#tpu.dimension_semantics<parallel>], iteration_bounds = array<i64: 2>, scalar_prefetch = 0 : i64, scratch_operands = 0 : i64, tpu.core_type = #tpu.core_type<tc>, window_params = [{transform_indices = @transform_0, window_bounds = array<i64: 128, 256>}, {pipeline_mode = #tpu.pipeline_mode<synchronous>, transform_indices = @transform_1, window_bounds = array<i64: 256, 128>}, {pipeline_mode = #tpu.pipeline_mode<synchronous>, transform_indices = @transform_2, window_bounds = array<i64: 128, 128>}, {transform_indices = @transform_3, window_bounds = array<i64: 128, 128>}]} {
    %c0 = arith.constant 0 : index
    %c0_0 = arith.constant 0 : index
    %0 = vector.load %arg1[%c0, %c0_0] : memref<128x256xbf16, #tpu.memory_space<vmem>>, vector<128x256xbf16>
    %c0_1 = arith.constant 0 : index
    %c0_2 = arith.constant 0 : index
    %1 = vector.load %arg2[%c0_1, %c0_2] : memref<256x128xbf16, #tpu.memory_space<vmem>>, vector<256x128xbf16>
    %cst = arith.constant dense<0.000000e+00> : vector<128x128xf32>
    %2 = tpu.matmul %0, %1, %cst {dimension_numbers = #tpu.dot_dimension_numbers<[1], [0], [0], [1], [0, 0, 1, 1], [], []>} : vector<128x256xbf16>, vector<256x128xbf16>, vector<128x128xf32> -> vector<128x128xf32>
    %3 = arith.truncf %2 : vector<128x128xf32> to vector<128x128xbf16>
    %c0_3 = arith.constant 0 : index
    %c0_4 = arith.constant 0 : index
    %4 = vector.load %arg3[%c0_3, %c0_4] : memref<128x128xbf16, #tpu.memory_space<vmem>>, vector<128x128xbf16>
    %cst_5 = arith.constant dense<0.000000e+00> : vector<128x128xf32>
    %5 = tpu.matmul %3, %4, %cst_5 {dimension_numbers = #tpu.dot_dimension_numbers<[1], [0], [0], [1], [0, 0, 1, 1], [], []>} : vector<128x128xbf16>, vector<128x128xbf16>, vector<128x128xf32> -> vector<128x128xf32>
    %cst_6 = arith.constant 0.000000e+00 : f32
    %6 = vector.broadcast %cst_6 : f32 to vector<128x128xf32>
    %7 = arith.maximumf %5, %6 : vector<128x128xf32>
    %8 = arith.truncf %7 : vector<128x128xf32> to vector<128x128xbf16>
    %c0_7 = arith.constant 0 : index
    %c0_8 = arith.constant 0 : index
    %9 = vector.load %arg4[%c0_7, %c0_8] : memref<128x128xbf16, #tpu.memory_space<vmem>>, vector<128x128xbf16>
    tpu.vector_store %arg4[%c0_7, %c0_8], %8 {strides = array<i32>} : memref<128x128xbf16, #tpu.memory_space<vmem>>, vector<128x128xbf16>,
    return
  }
  func.func @transform_0(%arg0: i32) -> (i32, i32) {
    %c0_i32 = arith.constant 0 : i32
    %c0_i32_0 = arith.constant 0 : i32
    return %arg0, %c0_i32 : i32, i32
  }
  func.func @transform_1(%arg0: i32) -> (i32, i32) {
    %c0_i32 = arith.constant 0 : i32
    %c0_i32_0 = arith.constant 0 : i32
    %c0_i32_1 = arith.constant 0 : i32
    return %c0_i32, %c0_i32_0 : i32, i32
  }
  func.func @transform_2(%arg0: i32) -> (i32, i32) {
    %c0_i32 = arith.constant 0 : i32
    %c0_i32_0 = arith.constant 0 : i32
    %c0_i32_1 = arith.constant 0 : i32
    return %c0_i32, %c0_i32_0 : i32, i32
  }
  func.func @transform_3(%arg0: i32) -> (i32, i32) {
    %c0_i32 = arith.constant 0 : i32
    %c0_i32_0 = arith.constant 0 : i32
    return %arg0, %c0_i32 : i32, i32
  }
}

</mosaic_0001>

<bundles_post_ra>
// kernel: tpu_custom_call.1
= control target key start
LH: loop header
LB: loop body
LE: loop exit
PB: predicated region body
PF: predicated region fallthrough
CT: control target
= control target key end

     0   :  { %8 = vsyncpa [#allocation3], 0  ;;  %s1740_s0 = inlined_call_operand.hbm [shape: bf16[256,256], index: 0, kind: input, shape index: {}]   ;;  %s1741_s1 = inlined_call_operand.hbm [shape: bf16[256,128], index: 1, kind: input, shape index: {}]   ;;  %s1742_s2 = inlined_call_operand.hbm [shape: bf16[128,128], index: 2, kind: input, shape index: {}]   ;;  %s1743_s3 = inlined_call_operand.hbm [shape: bf16[256,128], index: 3, kind: output, shape index: {}]  }
   0x1   :  { %10 = vsyncpa [#allocation3 + $0x1], 0 }
   0x2   :  { %11 = vsyncpa [#allocation6], 0 }
   0x3   :  { %12 = vsyncpa [#allocation4], 0 }
   0x4   :  { %14 = vsyncpa [#allocation4 + $0x1], 0  ;;  %s1476_s12 = smov 0   ;;  %s1478_s13 = smov 0  }
   0x5   :  { %s1480_s14 = smov 0   ;;  %s1482_s15 = smov 0  }
   0x6 LB: > { %s1497_s16 = sadd.s32 4294967295, %s1444_s15   ;;  %s914_s17 = sadd.s32 4294967294, %s1444_s15   ;;  %s1444_s15 = sphi %s1482_s15, %s1763_s15   ;;  %s1440_s14 = sphi %s1480_s14, %s1762_s14   ;;  %s1436_s13 = sphi %s1478_s13, %s1761_s13   ;;  %s1432_s12 = sphi %s1476_s12, %s1760_s12  }
   0x7   : > { %p40_p0 = scmp.ne.s32.totalorder %s1436_s13, %s1432_s12  ;;  %p1744_p1 = scmp.eq.s32.totalorder %s1497_s16, 0 }
   0x8   : > { %p112_p3 = scmp.eq.s32.totalorder %s914_s17, 1  ;;  %p915_p5 = scmp.ge.s32.totalorder %s1444_s15, 1 }
   0x9   : > { %p1506_p4 = por %p1744_p1, %p40_p0  ;;  %p119_p7 = scmp.lt.s32.totalorder %s1444_s15, 3 }
   0xa   : > { %p1511_p6 = por %p112_p3, %p40_p0  ;;  %s1446_s21 = smov [#allocation5]  }
   0xb   : > { %s1747_s18 = scalar_select %p1506_p4, 1, 0 }
   0xc   : > { %s1748_s19 = scalar_select %p1511_p6, 1, 0 }
   0xd   : > { %p1516_p8 = pnand %p915_p5, %p119_p7  ;;  %s131_s22 = sshll.u32 %s1446_s21, 4  ;;  %s1520_s22 = int_to_ptr.vmem [resolvable:$true] %s131_s22 }
   0xe   : > { %s1447_s24 = smov [#allocation7]   ;;  %s1288_s28 = scalar_lea.hbm %s1741_s1, 2048 }
   0xf   : > { %p1179_p9 = pneg %p1516_p8  ;;  %s144_s25 = sshll.u32 %s1447_s24, 4  ;;  %s1531_s25 = int_to_ptr.vmem [resolvable:$true] %s144_s25 }
  0x10   : > { %p1289_p12 = scmp.ne.s32.totalorder %s1741_s1, %s1288_s28  ;;  %p1295_p5 = scmp.lt.u32.totalorder %s1288_s28, %s1741_s1 }
  0x11   : > { %p1527_p11 = pnand %p1179_p9, %p1744_p1 }
  0x13   : > { %p1290_p13 = pneg %p1527_p11 }
  0x15   : > { %p1291_p0 = pnand %p1290_p13, %p1289_p12 }
  0x17   : > { %p1292_p3 = pneg %p1291_p0 }
  0x19   : > { %p1297_p7 = pnand %p1295_p5, %p1292_p3 }
  0x1b   : > { %1300 = shalt.err (!%p1297_p7)
}
  0x1c   : > { %s1301_s6 = scalar_lea.vmem %s1520_s22, 2048  ;;  %p1309_p2 = scmp.lt.s32.totalorder %s1520_s22, %s1520_s22 }
  0x1d   : > { %p1302_p9 = scmp.ne.s32.totalorder %s1520_s22, %s1301_s6  ;;  %p1310_p12 = scmp.lt.s32.totalorder %s1301_s6, %s1301_s6 }
  0x1f   : > { %p1304_p10 = pnand %p1302_p9, %p1290_p13  ;;  %p1311_p0 = por %p1310_p12, %p1309_p2 }
  0x21   : > { %p1305_p1 = pneg %p1304_p10 }
  0x23   : > { %p1312_p6 = pnand %p1311_p0, %p1305_p1 }
  0x25   : > { %1315 = shalt.err (!%p1312_p6)
}
  0x26   : > { %s1448_s7 = smov 64   ;;  %s1449_s8 = smov 4  }
  0x27   : > { %1182 = dma.hbm_to_vmem [thread:$0]  (!%p1527_p11), %s1741_s1, 2048, %s1520_s22, [#allocation6], %s1448_s7, %s1448_s7, %s1449_s8  }
  0x28   : > { %s1316_s21 = scalar_lea.hbm %s1742_s2, 1024 }
  0x29   : > { %p1317_p2 = scmp.ne.s32.totalorder %s1742_s2, %s1316_s21  ;;  %p1323_p10 = scmp.lt.u32.totalorder %s1316_s21, %s1742_s2 }
  0x2b   : > { %p1319_p1 = pnand %p1317_p2, %p1290_p13 }
  0x2d   : > { %p1320_p6 = pneg %p1319_p1 }
  0x2f   : > { %p1325_p3 = pnand %p1323_p10, %p1320_p6 }
  0x31   : > { %1328 = shalt.err (!%p1325_p3)
}
  0x32   : > { %s1329_s22 = scalar_lea.vmem %s1531_s25, 1024  ;;  %p1337_p12 = scmp.lt.s32.totalorder %s1531_s25, %s1531_s25 }
  0x33   : > { %p1330_p5 = scmp.ne.s32.totalorder %s1531_s25, %s1329_s22  ;;  %p1338_p0 = scmp.lt.s32.totalorder %s1329_s22, %s1329_s22 }
  0x35   : > { %p1332_p7 = pnand %p1330_p5, %p1290_p13  ;;  %p1339_p2 = por %p1338_p0, %p1337_p12 }
  0x37   : > { %p1333_p9 = pneg %p1332_p7 }
  0x39   : > { %p1340_p1 = pnand %p1339_p2, %p1333_p9 }
  0x3b   : > { %1343 = shalt.err (!%p1340_p1)
}
  0x3c   : > { %1185 = dma.hbm_to_vmem [thread:$0]  (!%p1527_p11), %s1742_s2, 1024, %s1531_s25, [#allocation6], %s1448_s7, %s1448_s7, %s1449_s8  }
  0x3d   : > { %s1586_s4 = sadd.s32 1, %s1444_s15   ;;  %s27_s23 = sadd.s32 1, %s1440_s14 }
  0x3e   : > { %s24_s5 = ssub.s32 %s1444_s15, %s1586_s4  ;;  %p34_p13 = scmp.ne.s32.totalorder %s1440_s14, %s1436_s13 }
  0x3f   : > { %p25_p6 = scmp.eq.s32.totalorder %s24_s5, 0  ;;  %p35_p10 = scmp.eq.s32.totalorder %s1444_s15, 0 }
  0x40   : > { %p1751_p3 = scmp.eq.s32.totalorder %s1497_s16, 1  ;;  %p1196_p7 = scmp.lt.s32.totalorder %s1444_s15, 2 }
  0x41   : > { %s1602_s9 = scalar_select %p25_p6, %s1440_s14, %s27_s23  }
  0x42   : > { %p1596_p5 = por %p1751_p3, %p34_p13  ;;  %p36_p9 = por %p35_p10, %p34_p13 }
  0x43   : > { %s158_s10 = sand.u32 1, %s1440_s14   ;;  %s990_s25 = sshll.u32 %s1444_s15, 11 }
  0x44   : > { %s1752_s6 = scalar_select %p1596_p5, 1, 0 }
  0x45   : > { %s919_s11 = sshll.u32 %s158_s10, 7  ;;  %s1609_s17 = scalar_lea.hbm %s1740_s0, %s990_s25 }
  0x46   : > { %s162_s21 = scalar_lea.vmem [#allocation2], %s919_s11  ;;  %p1613_p11 = pnand %p1196_p7, %p36_p9 }
  0x47   : > { %s170_s24 = sshll.u32 %s162_s21, 4  ;;  %s1617_s27 = scalar_lea.sflag [#allocation3], %s158_s10  ;;  %s1611_s24 = int_to_ptr.vmem [resolvable:$true] %s170_s24 }
  0x48   : > { %s1344_s28 = scalar_lea.hbm %s1609_s17, 2048  ;;  %p1346_p0 = pneg %p1613_p11 }
  0x49   : > { %p1345_p12 = scmp.ne.s32.totalorder %s1609_s17, %s1344_s28  ;;  %s1349_s30 = scalar_lea.hbm %s1740_s0, 4096 }
  0x4a   : > { %p1350_p13 = scmp.lt.u32.totalorder %s1609_s17, %s1740_s0  ;;  %p1351_p6 = scmp.lt.u32.totalorder %s1349_s30, %s1344_s28 }
  0x4b   : > { %p1347_p2 = pnand %p1346_p0, %p1345_p12  ;;  %p1353_p3 = scmp.lt.u32.totalorder %s1344_s28, %s1609_s17 }
  0x4c   : > { %p1352_p10 = por %p1351_p6, %p1350_p13 }
  0x4d   : > { %p1348_p1 = pneg %p1347_p2 }
  0x4e   : > { %p1354_p7 = por %p1353_p3, %p1352_p10 }
  0x50   : > { %p1355_p9 = pnand %p1354_p7, %p1348_p1 }
  0x52   : > { %1358 = shalt.err (!%p1355_p9)
}
  0x53   : > { %s1359_s10 = scalar_lea.vmem %s1611_s24, 2048  ;;  %s1450_s11 = smov [#allocation2]  }
  0x54   : > { %p1360_p12 = scmp.ne.s32.totalorder %s1611_s24, %s1359_s10  ;;  %s1364_s25 = sshll.u32 %s1450_s11, 4  ;;  %s1365_s25 = int_to_ptr.vmem [resolvable:$false] %s1364_s25 }
  0x55   : > { %s1366_s7 = scalar_lea.vmem %s1365_s25, 4096  ;;  %p1367_p4 = scmp.lt.s32.totalorder %s1611_s24, %s1365_s25 }
  0x56   : > { %p1362_p2 = pnand %p1360_p12, %p1346_p0  ;;  %p1368_p13 = scmp.lt.s32.totalorder %s1366_s7, %s1359_s10 }
  0x58   : > { %p1363_p5 = pneg %p1362_p2  ;;  %p1369_p6 = por %p1368_p13, %p1367_p4 }
  0x5a   : > { %p1370_p10 = pnand %p1369_p6, %p1363_p5 }
  0x5c   : > { %1373 = shalt.err (!%p1370_p10)
}
  0x5d   : > { %s1451_s8 = smov 128   ;;  %s1452_s21 = smov 8  }
  0x5e   : > { %1189 = dma.hbm_to_vmem [thread:$0]  (!%p1613_p11), %s1609_s17, 2048, %s1611_s24, %s1617_s27, %s1451_s8, %s1451_s8, %s1452_s21  }
  0x5f   : > { %182 = sbr.rel (%p1516_p8) target bundleno = 648 (0x288), region = 32  ;;  %s1648_s28 = sand.u32 (!%p1516_p8), 1, %s1436_s13  }
  0x60   : > { %s924_s22 = sshll.u32 (!%p1516_p8), %s1648_s28, 7  ;;  %s185_s29 = scalar_lea.sflag (!%p1516_p8), [#allocation3], %s1648_s28 }
  0x61   : > { %s1652_s30 = scalar_lea.vmem (!%p1516_p8), [#allocation2], %s924_s22  ;;  %p1754_p4 = scmp.ne.s32.totalorder (!%p1516_p8), %s1747_s18, 0 }
  0x66   : > { %1419 = dma.done.wait (%p1754_p4), %s185_s29, 2048  }
  0x67   : > { %1421 = vsyncadd (%p1754_p4), %s185_s29, 4294965248  ;;  %p1755_p5 = scmp.eq.s32.totalorder %s1497_s16, 0 }
  0x69   : > { %1423 = dma.done.wait (%p1755_p5), [#allocation6], 3072   ;;  %p1756_p8 = pmov %p1755_p5 }
  0x6a   : > { %v1240_v0 = vld [vmem:[#allocation5 + $0x40] sm:$0xff]   ;;  %v1242_v2 = vld [vmem:[#allocation5 + $0x48] sm:$0xff]   ;;  %v1244_v4 = vld [vmem:[#allocation5 + $0x50] sm:$0xff]   ;;  %s927_s18 = sshll.u32 %s1648_s28, 6  ;;  %s1007_s24 = sshll.u32 %s1497_s16, 10 }
  0x6b   : > { %1425 = vsyncadd (%p1756_p8), [#allocation6], 4294964224  ;;  %v1241_v1 = vld [vmem:[#allocation5] sm:$0xff]   ;;  %1055 = vmatprep.subr.bf16.mxu0 %v1240_v0  ;;  %v1243_v3 = vld [vmem:[#allocation5 + $0x8] sm:$0xff]   ;;  %s1679_s20 = scalar_lea.vmem [#allocation8], %s927_s18  ;;  %s1694_s23 = scalar_lea.hbm %s1743_s3, %s1007_s24 }
  0x6c   : > { %1056 = vmatpush3.bf16.msra.mxu0 %v1241_v1  ;;  %v1245_v5 = vld [vmem:[#allocation5 + $0x10] sm:$0xff]   ;;  %v1246_v6 = vld [vmem:[#allocation5 + $0x58] sm:$0xff]   ;;  %v1248_v8 = vld [vmem:[#allocation5 + $0x60] sm:$0xff]   ;;  %s822_s17 = sshll.u32 %s1679_s20, 4  ;;  %s809_s16 = scalar_lea.sflag [#allocation4], %s1648_s28  ;;  %s1689_s17 = int_to_ptr.vmem [resolvable:$true] %s822_s17 }
  0x6d   : > { %1057 = vmatprep.subr.bf16.mxu0 %v1242_v2  ;;  %v1247_v7 = vld [vmem:[#allocation5 + $0x18] sm:$0xff]   ;;  %v1249_v9 = vld [vmem:[#allocation5 + $0x20] sm:$0xff]   ;;  %v1250_v10 = vld [vmem:[#allocation5 + $0x68] sm:$0xff]   ;;  %s1374_s5 = scalar_lea.vmem %s1689_s17, 1024  ;;  %p1757_p0 = scmp.ne.s32.totalorder %s1752_s6, 0 }
  0x6e   : > { %v1258_v11 = vld [vmem:[%s1652_s30 + $0x4] ss:$8 sps:$4 sm:$0xff]   ;;  %v1252_v13 = vld [vmem:[#allocation5 + $0x70] sm:$0xff]   ;;  %v1254_v15 = vld [vmem:[#allocation5 + $0x78] sm:$0xff]   ;;  %p1375_p11 = scmp.ne.s32.totalorder %s1689_s17, %s1374_s5  ;;  %s1453_s10 = smov [#allocation8]  }
  0x6f   : > { %v1251_v12 = vld [vmem:[#allocation5 + $0x28] sm:$0xff]   ;;  %478 = vmatprep.mubr.bf16.mxu0 %v1258_v11  ;;  %v1253_v14 = vld [vmem:[#allocation5 + $0x30] sm:$0xff]   ;;  %v1255_v16 = vld [vmem:[#allocation5 + $0x38] sm:$0xff]   ;;  %s1378_s11 = sshll.u32 %s1453_s10, 4  ;;  %s1379_s11 = int_to_ptr.vmem [resolvable:$false] %s1378_s11 }
  0x70   : > { %1058 = vmatpush3.bf16.msra.mxu0 %v1243_v3  ;;  %v1280_v17 = vld [vmem:[#allocation7] sm:$0xff]   ;;  %v1281_v19 = vld [vmem:[#allocation7 + $0x8] sm:$0xff]   ;;  %v1259_v20 = vld [vmem:[%s1652_s30 + $0x14] ss:$8 sps:$4 sm:$0xff]   ;;  %p1376_p1 = pnand %p1375_p11, %p1757_p0  ;;  %s1380_s25 = scalar_lea.vmem %s1379_s11, 2048 }
  0x71   : > { %1059 = vmatprep.subr.bf16.mxu0 %v1244_v4  ;;  %v1256_v18 = vld [vmem:[%s1652_s30] ss:$8 sps:$4 sm:$0xff]   ;;  %1135 = vmatprep.subr.bf16.mxu1 %v1280_v17  ;;  %v1282_v21 = vld [vmem:[#allocation7 + $0x10] sm:$0xff]   ;;  %v1283_v22 = vld [vmem:[#allocation7 + $0x18] sm:$0xff]   ;;  %p1381_p7 = scmp.lt.s32.totalorder %s1689_s17, %s1379_s11  ;;  %p1382_p9 = scmp.lt.s32.totalorder %s1380_s25, %s1374_s5 }
  0x72   : > { %1136 = vmatpush3.bf16.msra.mxu1 %v1280_v17  ;;  %v1261_v23 = vld [vmem:[%s1652_s30 + $0x10] ss:$8 sps:$4 sm:$0xff]   ;;  %v1262_v24 = vld [vmem:[%s1652_s30 + $0x24] ss:$8 sps:$4 sm:$0xff]   ;;  %v1264_v25 = vld [vmem:[%s1652_s30 + $0x20] ss:$8 sps:$4 sm:$0xff]   ;;  %p1377_p3 = pneg %p1376_p1 }
  0x73   : > { %1137 = vmatprep.subr.bf16.mxu1 %v1281_v19  ;;  %v1265_v26 = vld [vmem:[%s1652_s30 + $0x34] ss:$8 sps:$4 sm:$0xff]   ;;  %v1267_v27 = vld [vmem:[%s1652_s30 + $0x30] ss:$8 sps:$4 sm:$0xff]   ;;  %v1268_v28 = vld [vmem:[%s1652_s30 + $0x44] ss:$8 sps:$4 sm:$0xff]   ;;  %p1383_p12 = por %p1382_p9, %p1381_p7 }
  0x74   : > { %1060 = vmatpush3.bf16.msra.mxu0 %v1245_v5  ;;  %v1270_v29 = vld [vmem:[%s1652_s30 + $0x40] ss:$8 sps:$4 sm:$0xff]   ;;  %v1271_v30 = vld [vmem:[%s1652_s30 + $0x54] ss:$8 sps:$4 sm:$0xff]   ;;  %v1273_v31 = vld [vmem:[%s1652_s30 + $0x50] ss:$8 sps:$4 sm:$0xff]  }
  0x75   : > { %1061 = vmatprep.subr.bf16.mxu0 %v1246_v6  ;;  %v1274_v32 = vld [vmem:[%s1652_s30 + $0x64] ss:$8 sps:$4 sm:$0xff]   ;;  %v1276_v33 = vld [vmem:[%s1652_s30 + $0x60] ss:$8 sps:$4 sm:$0xff]   ;;  %v1277_v34 = vld [vmem:[%s1652_s30 + $0x74] ss:$8 sps:$4 sm:$0xff]   ;;  %p1384_p2 = pnand %p1383_p12, %p1377_p3 }
  0x76   : > { %1138 = vmatpush3.bf16.msra.mxu1 %v1281_v19  ;;  %v1279_v35 = vld [vmem:[%s1652_s30 + $0x70] ss:$8 sps:$4 sm:$0xff]   ;;  %v1284_v36 = vld [vmem:[#allocation7 + $0x20] sm:$0xff]   ;;  %v1285_v37 = vld [vmem:[#allocation7 + $0x28] sm:$0xff]  }
  0x77   : > { %1139 = vmatprep.subr.bf16.mxu1 %v1282_v21  ;;  %v1286_v38 = vld [vmem:[#allocation7 + $0x30] sm:$0xff]   ;;  %v1287_v39 = vld [vmem:[#allocation7 + $0x38] sm:$0xff]  }
  0x78   : > { %1062 = vmatpush3.bf16.msra.mxu0 %v1247_v7 }
  0x79   : > { %1063 = vmatprep.subr.bf16.mxu0 %v1248_v8 }
  0x7a   : > { %1140 = vmatpush3.bf16.msra.mxu1 %v1282_v21 }
  0x7b   : > { %1141 = vmatprep.subr.bf16.mxu1 %v1283_v22 }
  0x7c   : > { %1064 = vmatpush3.bf16.msra.mxu0 %v1249_v9 }
  0x7d   : > { %1065 = vmatprep.subr.bf16.mxu0 %v1250_v10 }
  0x7e   : > { %1142 = vmatpush3.bf16.msra.mxu1 %v1283_v22 }
  0x7f   : > { %1143 = vmatprep.subr.bf16.mxu1 %v1284_v36 }
  0x80   : > { %1066 = vmatpush3.bf16.msra.mxu0 %v1251_v12 }
  0x81   : > { %1067 = vmatprep.subr.bf16.mxu0 %v1252_v13 }
  0x82   : > { %1144 = vmatpush3.bf16.msra.mxu1 %v1284_v36 }
  0x83   : > { %1145 = vmatprep.subr.bf16.mxu1 %v1285_v37 }
  0x84   : > { %1068 = vmatpush3.bf16.msra.mxu0 %v1253_v14 }
  0x85   : > { %1069 = vmatprep.subr.bf16.mxu0 %v1254_v15 }
  0x86   : > { %1146 = vmatpush3.bf16.msra.mxu1 %v1285_v37 }
  0x87   : > { %1147 = vmatprep.subr.bf16.mxu1 %v1286_v38 }
  0x88   : > { %1070 = vmatpush3.bf16.msra.mxu0 %v1255_v16 }
  0x8a   : > { %1148 = vmatpush3.bf16.msra.mxu1 %v1286_v38 }
  0x8b   : > { %479 = vmatmul.mubr.bf16.vlgmr.msra.gmra.mrb[0].mxu0 %v1256_v18  ;;  %1149 = vmatprep.subr.bf16.mxu1 %v1287_v39 }
  0x8c   : > { %486 = vmatprep.mubr.bf16.mxu0 %v1259_v20 }
  0x8e   : > { %1150 = vmatpush3.bf16.msra.mxu1 %v1287_v39 }
  0x93   : > { %487 = vmatmul.mubr.bf16.gmra.mrb[4].mxu0 %v1261_v23 }
  0x94   : > { %494 = vmatprep.mubr.bf16.mxu0 %v1262_v24 }
  0x9b   : > { %495 = vmatmul.mubr.bf16.gmra.mrb[8].mxu0 %v1264_v25 }
  0x9c   : > { %502 = vmatprep.mubr.bf16.mxu0 %v1265_v26 }
  0xa3   : > { %503 = vmatmul.mubr.bf16.gmra.mrb[12].mxu0 %v1267_v27 }
  0xa4   : > { %510 = vmatprep.mubr.bf16.mxu0 %v1268_v28 }
  0xab   : > { %511 = vmatmul.mubr.bf16.gmra.mrb[16].mxu0 %v1270_v29 }
  0xac   : > { %518 = vmatprep.mubr.bf16.mxu0 %v1271_v30 }
  0xb3   : > { %519 = vmatmul.mubr.bf16.gmra.mrb[20].mxu0 %v1273_v31 }
  0xb4   : > { %526 = vmatprep.mubr.bf16.mxu0 %v1274_v32 }
  0xbb   : > { %527 = vmatmul.mubr.bf16.gmra.mrb[24].mxu0 %v1276_v33 }
  0xbc   : > { %534 = vmatprep.mubr.bf16.mxu0 %v1277_v34 }
  0xc3   : > { %535 = vmatmul.mubr.bf16.gmra.mrb[28].mxu0 %v1279_v35 }
 0x15e   : > { %v1071_v40 = vpop.f32.mrb[0].mxu0 }
 0x15f   : > { %v1072_v41 = vpop.f32.mrb[1].mxu0 }
 0x160   : > { %v1073_v42 = vadd.f32 %v1072_v41, %v1071_v40  ;;  %v1074_v43 = vpop.f32.mrb[2].mxu0 }
 0x161   : > { %v1075_v44 = vpop.f32.mrb[3].mxu0 }
 0x162   : > { %v1076_v45 = vadd.f32 %v1075_v44, %v1074_v43 }
 0x164   : > { %v543_v46 = vpack.c.bf16 %v1076_v45, %v1073_v42 }
 0x166   : > { %v1077_v47 = vpop.f32.mrb[4].mxu0  ;;  %1151 = vmatprep.mubr.bf16.mxu1 %v543_v46 }
 0x167   : > { %v1078_v48 = vpop.f32.mrb[5].mxu0 }
 0x168   : > { %v1079_v49 = vadd.f32 %v1078_v48, %v1077_v47  ;;  %v1080_v50 = vpop.f32.mrb[6].mxu0 }
 0x169   : > { %v1081_v51 = vpop.f32.mrb[7].mxu0 }
 0x16a   : > { %v1082_v52 = vadd.f32 %v1081_v51, %v1080_v50 }
 0x16c   : > { %v544_v53 = vpack.c.bf16 %v1082_v52, %v1079_v49 }
 0x16e   : > { %v1083_v54 = vpop.f32.mrb[8].mxu0  ;;  %1152 = vmatmul.mubr.bf16.vlgmr.msra.gmra.mrb[0].mxu1 %v544_v53 }
 0x16f   : > { %v1084_v55 = vpop.f32.mrb[9].mxu0 }
 0x170   : > { %v1085_v56 = vadd.f32 %v1084_v55, %v1083_v54  ;;  %v1086_v57 = vpop.f32.mrb[10].mxu0 }
 0x171   : > { %v1087_v58 = vpop.f32.mrb[11].mxu0 }
 0x172   : > { %v1088_v59 = vadd.f32 %v1087_v58, %v1086_v57 }
 0x174   : > { %v545_v60 = vpack.c.bf16 %v1088_v59, %v1085_v56 }
 0x176   : > { %v1089_v61 = vpop.f32.mrb[12].mxu0  ;;  %1155 = vmatprep.mubr.bf16.mxu1 %v545_v60 }
 0x177   : > { %v1090_v62 = vpop.f32.mrb[13].mxu0 }
 0x178   : > { %v1091_v63 = vadd.f32 %v1090_v62, %v1089_v61  ;;  %v1092_v0 = vpop.f32.mrb[14].mxu0 }
 0x179   : > { %v1093_v1 = vpop.f32.mrb[15].mxu0 }
 0x17a   : > { %v1094_v2 = vadd.f32 %v1093_v1, %v1092_v0 }
 0x17c   : > { %v546_v3 = vpack.c.bf16 %v1094_v2, %v1091_v63 }
 0x17e   : > { %v1095_v4 = vpop.f32.mrb[16].mxu0  ;;  %1156 = vmatmul.mubr.bf16.gmra.mrb[4].mxu1 %v546_v3 }
 0x17f   : > { %v1096_v5 = vpop.f32.mrb[17].mxu0 }
 0x180   : > { %v1097_v6 = vadd.f32 %v1096_v5, %v1095_v4  ;;  %v1098_v7 = vpop.f32.mrb[18].mxu0 }
 0x181   : > { %v1099_v8 = vpop.f32.mrb[19].mxu0 }
 0x182   : > { %v1100_v9 = vadd.f32 %v1099_v8, %v1098_v7 }
 0x184   : > { %v547_v10 = vpack.c.bf16 %v1100_v9, %v1097_v6 }
 0x186   : > { %v1101_v11 = vpop.f32.mrb[20].mxu0  ;;  %1159 = vmatprep.mubr.bf16.mxu1 %v547_v10 }
 0x187   : > { %v1102_v12 = vpop.f32.mrb[21].mxu0 }
 0x188   : > { %v1103_v13 = vadd.f32 %v1102_v12, %v1101_v11  ;;  %v1104_v14 = vpop.f32.mrb[22].mxu0 }
 0x189   : > { %v1105_v15 = vpop.f32.mrb[23].mxu0 }
 0x18a   : > { %v1106_v16 = vadd.f32 %v1105_v15, %v1104_v14 }
 0x18c   : > { %v548_v17 = vpack.c.bf16 %v1106_v16, %v1103_v13 }
 0x18e   : > { %v1107_v18 = vpop.f32.mrb[24].mxu0  ;;  %1160 = vmatmul.mubr.bf16.gmra.mrb[8].mxu1 %v548_v17 }
 0x18f   : > { %v1108_v19 = vpop.f32.mrb[25].mxu0 }
 0x190   : > { %v1109_v20 = vadd.f32 %v1108_v19, %v1107_v18  ;;  %v1110_v21 = vpop.f32.mrb[26].mxu0 }
 0x191   : > { %v1111_v22 = vpop.f32.mrb[27].mxu0 }
 0x192   : > { %v1112_v23 = vadd.f32 %v1111_v22, %v1110_v21 }
 0x194   : > { %v549_v24 = vpack.c.bf16 %v1112_v23, %v1109_v20 }
 0x196   : > { %v1113_v25 = vpop.f32.mrb[28].mxu0  ;;  %1163 = vmatprep.mubr.bf16.mxu1 %v549_v24 }
 0x197   : > { %v1114_v26 = vpop.f32.mrb[29].mxu0 }
 0x198   : > { %v1115_v27 = vadd.f32 %v1114_v26, %v1113_v25  ;;  %v1116_v28 = vpop.f32.mrb[30].mxu0 }
 0x199   : > { %v1117_v29 = vpop.f32.mrb[31].mxu0 }
 0x19a   : > { %v1118_v30 = vadd.f32 %v1117_v29, %v1116_v28 }
 0x19c   : > { %v550_v31 = vpack.c.bf16 %v1118_v30, %v1115_v27 }
 0x19e   : > { %1164 = vmatmul.mubr.bf16.gmra.mrb[12].mxu1 %v550_v31 }
 0x241   : > { %v1153_v32 = vpop.f32.mrb[0].mxu1 }
 0x242   : > { %v649_v33 = vpop.f32.mrb[1].mxu1  ;;  %v714_v35 = vmax.f32 %v1153_v32, 0.0 }
 0x243   : > { %v1154_v34 = vpop.f32.mrb[2].mxu1  ;;  %v712_v38 = vmax.f32 %v649_v33, 0.0 }
 0x244   : > { %v715_v36 = vmax.f32 %v1154_v34, 0.0  ;;  %v652_v37 = vpop.f32.mrb[3].mxu1 }
 0x245   : > { %v713_v39 = vmax.f32 %v652_v37, 0.0 }
 0x246   : > { %v1016_v40 = vpack.c.bf16 %v715_v36, %v714_v35 }
 0x247   : > { %v1011_v41 = vpack.c.bf16 %v713_v39, %v712_v38 }
 0x248   : > { %1048 = vst [vmem:[%s1679_s20 + $0x8] sm:$0xff] %v1016_v40  }
 0x249   : > { %1012 = vst [vmem:[%s1679_s20] sm:$0xff] %v1011_v41  }
 0x251   : > { %v1157_v42 = vpop.f32.mrb[4].mxu1 }
 0x252   : > { %v665_v43 = vpop.f32.mrb[5].mxu1  ;;  %v718_v45 = vmax.f32 %v1157_v42, 0.0 }
 0x253   : > { %v1158_v44 = vpop.f32.mrb[6].mxu1  ;;  %v716_v48 = vmax.f32 %v665_v43, 0.0 }
 0x254   : > { %v719_v46 = vmax.f32 %v1158_v44, 0.0  ;;  %v668_v47 = vpop.f32.mrb[7].mxu1 }
 0x255   : > { %v717_v49 = vmax.f32 %v668_v47, 0.0 }
 0x256   : > { %v1026_v50 = vpack.c.bf16 %v719_v46, %v718_v45 }
 0x257   : > { %v1021_v51 = vpack.c.bf16 %v717_v49, %v716_v48 }
 0x258   : > { %1050 = vst [vmem:[%s1679_s20 + $0x18] sm:$0xff] %v1026_v50  }
 0x259   : > { %1049 = vst [vmem:[%s1679_s20 + $0x10] sm:$0xff] %v1021_v51  }
 0x261   : > { %v1161_v52 = vpop.f32.mrb[8].mxu1 }
 0x262   : > { %v681_v53 = vpop.f32.mrb[9].mxu1  ;;  %v722_v55 = vmax.f32 %v1161_v52, 0.0 }
 0x263   : > { %v1162_v54 = vpop.f32.mrb[10].mxu1  ;;  %v720_v58 = vmax.f32 %v681_v53, 0.0 }
 0x264   : > { %v723_v56 = vmax.f32 %v1162_v54, 0.0  ;;  %v684_v57 = vpop.f32.mrb[11].mxu1 }
 0x265   : > { %v721_v59 = vmax.f32 %v684_v57, 0.0 }
 0x266   : > { %v1036_v60 = vpack.c.bf16 %v723_v56, %v722_v55 }
 0x267   : > { %v1031_v61 = vpack.c.bf16 %v721_v59, %v720_v58 }
 0x268   : > { %1052 = vst [vmem:[%s1679_s20 + $0x28] sm:$0xff] %v1036_v60  }
 0x269   : > { %1051 = vst [vmem:[%s1679_s20 + $0x20] sm:$0xff] %v1031_v61  }
 0x271   : > { %v1165_v62 = vpop.f32.mrb[12].mxu1 }
 0x272   : > { %v697_v63 = vpop.f32.mrb[13].mxu1  ;;  %v726_v1 = vmax.f32 %v1165_v62, 0.0 }
 0x273   : > { %v1166_v0 = vpop.f32.mrb[14].mxu1  ;;  %v724_v4 = vmax.f32 %v697_v63, 0.0 }
 0x274   : > { %v727_v2 = vmax.f32 %v1166_v0, 0.0  ;;  %v700_v3 = vpop.f32.mrb[15].mxu1 }
 0x275   : > { %v725_v5 = vmax.f32 %v700_v3, 0.0 }
 0x276   : > { %v1046_v6 = vpack.c.bf16 %v727_v2, %v726_v1 }
 0x277   : > { %v1041_v7 = vpack.c.bf16 %v725_v5, %v724_v4 }
 0x278   : > { %1054 = vst [vmem:[%s1679_s20 + $0x38] sm:$0xff] %v1046_v6  }
 0x279   : > { %1053 = vst [vmem:[%s1679_s20 + $0x30] sm:$0xff] %v1041_v7  }
 0x27a   : > { %1387 = shalt.err (!%p1384_p2)
}
 0x27b   : > { %s1388_s7 = scalar_lea.hbm %s1694_s23, 1024  ;;  %s1392_s22 = scalar_lea.hbm %s1743_s3, 2048 }
 0x27c   : > { %p1389_p13 = scmp.ne.s32.totalorder %s1694_s23, %s1388_s7  ;;  %p1393_p4 = scmp.lt.u32.totalorder %s1694_s23, %s1743_s3 }
 0x27d   : > { %p1394_p5 = scmp.lt.u32.totalorder %s1392_s22, %s1388_s7  ;;  %p1396_p11 = scmp.lt.u32.totalorder %s1388_s7, %s1694_s23 }
 0x27e   : > { %p1390_p6 = pnand %p1389_p13, %p1757_p0 }
 0x27f   : > { %p1395_p8 = por %p1394_p5, %p1393_p4 }
 0x280   : > { %p1391_p10 = pneg %p1390_p6 }
 0x281   : > { %p1397_p1 = por %p1396_p11, %p1395_p8 }
 0x283   : > { %p1398_p3 = pnand %p1397_p1, %p1391_p10 }
 0x285   : > { %1401 = shalt.err (!%p1398_p3)
}
 0x286   : > { %s1454_s18 = smov 64   ;;  %s1455_s20 = smov 4  }
 0x287   : > { %1177 = dma.vmem_to_hbm [thread:$0]  (%p1757_p0), %s1689_s17, 1024, %s1694_s23, %s809_s16, %s1454_s18, %s1454_s18, %s1455_s20  }
 0x288 PF: > { %s837_s24 = sand.u32 1, %s1432_s12   ;;  %p1758_p7 = scmp.ne.s32.totalorder %s1748_s19, 0 }
 0x289   : > { %p1759_p9 = scmp.ge.s32.totalorder %s1444_s15, 2  ;;  %s838_s26 = scalar_lea.sflag [#allocation4], %s837_s24 }
 0x28b   : > { %p1191_p12 = pnand %p1759_p9, %p1758_p7 }
 0x28d   : > { %1427 = dma.done.wait (!%p1191_p12), %s838_s26, 1024  }
 0x28e   : > { %1429 = vsyncadd (!%p1191_p12), %s838_s26, 4294966272  ;;  %p17_p2 = scmp.ge.s32.totalorder %s1586_s4, 4   ;;  %s1760_s12 = smov %s1436_s13 }
 0x28f   : > { %s1761_s13 = smov %s1440_s14  ;;  %s1762_s14 = smov %s1602_s9 }
 0x290   : > { %s1763_s15 = smov %s1586_s4  ;;  %19 = sbr.rel (!%p17_p2) target bundleno = 6 (0x6), region = 85 }
 0x297   :  { %843 = vsyncpa [#allocation3], 1 }
 0x298   :  { %845 = vsyncpa [#allocation3 + $0x1], 1 }
 0x299   :  { %846 = vsyncpa [#allocation6], 1 }
 0x29a   :  { %847 = vsyncpa [#allocation4], 1 }
 0x29b   :  { %849 = vsyncpa [#allocation4 + $0x1], 1 }

</bundles_post_ra>
